<compile_context>
chip_gen: v7x
topology: tpu7x:2x2x1
jax: 0.10.0
libtpu: 0.0.40
codegen_flags: <defaults>
</compile_context>

<pallas_src>
import math
from functools import partial

import jax
import jax.numpy as jnp
import numpy as np
from jax.experimental import pallas as pl
from jax.experimental.pallas import tpu as pltpu


_LANE = 128
_MAX_PACK_WIDTH = 512          # widest lane-dense packing row (bf16 P matrix <= 512 KiB)


def _round_up(x, m):
    return -(-x // m) * m


def _sublane_multiple(dtype):
    b = jnp.dtype(dtype).itemsize
    if b >= 4:
        return 8
    if b == 2:
        return 16
    return 32


def _hw_config():
    """(vmem_limit_bytes, min_grid_steps) chosen per TPU generation.

    v5e / v6e: 128 MiB physical VMEM, 1 TensorCore -> big tiles, no forced split.
    v7x:       64 MiB per TensorCore, 2 TCs       -> modest tiles, >=4 even steps.
    Falls back to the conservative (v7x-safe) config if the query fails.
    """
    vmem_cap = 64 * 1024 * 1024
    try:
        info = pltpu.get_tpu_info()
        for name in ("vmem_capacity_bytes", "vmem_size_bytes", "vmem_bytes"):
            v = getattr(info, name, None)
            if v:
                vmem_cap = int(v)
                break
    except Exception:
        pass
    if vmem_cap >= 100 * 1024 * 1024:
        return 64 * 1024 * 1024, 1
    return 40 * 1024 * 1024, 4


def _tile_bytes_target(itemsize, vmem_limit):
    # Working set per grid step ~= 2x input tile + 2x output tile (double
    # buffering) + in-kernel f32 temporaries (scaled by 4/itemsize for
    # sub-32-bit activations).  Leave headroom inside the scoped limit.
    factor = 8 if itemsize >= 4 else 12
    return max(512 * 1024, vmem_limit // factor)


def _pick_row_tile(m, row_bytes, dtype, tile_target, min_steps):
    """Largest sublane-aligned row tile fitting the byte target, with an
    optional minimum number of grid steps (v7x megacore pipelining)."""
    sub = _sublane_multiple(dtype)
    tm = (tile_target // max(row_bytes, 1)) // sub * sub
    tm = max(sub, tm)
    if min_steps > 1:
        per_step = _round_up(-(-m // min_steps), sub)
        tm = min(tm, per_step)
    tm = min(tm, _round_up(m, sub))
    return max(tm, sub)


# --------------------------------------------------------------------------------------
# Kernels
# --------------------------------------------------------------------------------------

def _ln_lane_kernel(x_ref, w_ref, b_ref, o_ref, *, eps):
    # x_ref: (TM, C) tile, channel axis on lanes; single-pass stats over lanes.
    x = x_ref[...].astype(jnp.float32)
    mean = jnp.mean(x, axis=-1, keepdims=True)
    ex2 = jnp.mean(x * x, axis=-1, keepdims=True)
    var = jnp.maximum(ex2 - mean * mean, 0.0)
    inv = jax.lax.rsqrt(var + eps)
    y = (x - mean) * inv * w_ref[...].astype(jnp.float32) + b_ref[...].astype(jnp.float32)
    o_ref[...] = y.astype(o_ref.dtype)


def _group_sum_exact(v, p_bf16, n_split=3):
    """Segmented (per-group) sum along lanes via MXU matmuls with a 0/1
    block-diagonal matrix.  The f32 operand is split into bf16 pieces so every
    product is exact and accumulation happens in f32 on the MXU -> ~f32
    accuracy without any f32-matmul precision mode."""
    acc = None
    r = v
    for _ in range(n_split):
        hi = r.astype(jnp.bfloat16)
        part = jnp.dot(hi, p_bf16, preferred_element_type=jnp.float32)
        acc = part if acc is None else acc + part
        r = r - hi.astype(jnp.float32)
    return acc


def _ln_packed_kernel(x_ref, p_ref, w_ref, b_ref, o_ref, *, eps, c):
    # x_ref: (TM, W) tile; each row packs W // c independent channel groups of
    # size c (lane-dense view of a small-C channels_last tensor).  The two
    # segmented sums are independent (single pass), so they pipeline on the MXU.
    x = x_ref[...].astype(jnp.float32)
    p = p_ref[...]                       # (W, W) bf16 0/1: same-group indicator
    inv_c = 1.0 / float(c)
    mean = _group_sum_exact(x, p) * inv_c
    ex2 = _group_sum_exact(x * x, p) * inv_c
    var = jnp.maximum(ex2 - mean * mean, 0.0)
    inv = jax.lax.rsqrt(var + eps)
    y = (x - mean) * inv * w_ref[...].astype(jnp.float32) + b_ref[...].astype(jnp.float32)
    o_ref[...] = y.astype(o_ref.dtype)


def _ln_cf_kernel(x_ref, w_ref, b_ref, o_ref, *, eps):
    # x_ref: (NB, C, TL) NCHW tile: channels on sublanes, spatial on lanes.
    # Reduction over the sublane (channel) axis runs on the XLU (idle here).
    x = x_ref[...].astype(jnp.float32)
    mean = jnp.mean(x, axis=1, keepdims=True)
    ex2 = jnp.mean(x * x, axis=1, keepdims=True)
    var = jnp.maximum(ex2 - mean * mean, 0.0)
    inv = jax.lax.rsqrt(var + eps)
    w = w_ref[...].astype(jnp.float32)[None]   # (1, C, 1)
    b = b_ref[...].astype(jnp.float32)[None]
    o_ref[...] = ((x - mean) * inv * w + b).astype(o_ref.dtype)


# --------------------------------------------------------------------------------------
# Wrappers
# --------------------------------------------------------------------------------------

def _layer_norm_channels_last(x, weight, bias, eps):
    orig_shape = x.shape
    C = int(orig_shape[-1])
    M = int(np.prod(orig_shape[:-1])) if len(orig_shape) > 1 else 1
    dtype = x.dtype
    itemsize = jnp.dtype(dtype).itemsize

    vmem_limit, min_steps = _hw_config()
    tile_target = _tile_bytes_target(itemsize, vmem_limit)
    cparams = pltpu.CompilerParams(
        dimension_semantics=("parallel",),
        vmem_limit_bytes=vmem_limit,
    )

    # Lane-dense packed path for small C: fold G rows into one W-lane row via a
    # pure reshape (no data movement), W = lcm(C, 128).  Covers C = 4 ... 96/192.
    if C < _LANE:
        W = C * _LANE // math.gcd(C, _LANE)
        G = W // C
        if W <= _MAX_PACK_WIDTH and M % G == 0:
            Mp = (M * C) // W
            x2 = x.reshape(Mp, W)                           # pure view
            w2 = jnp.tile(weight.reshape(-1), G).reshape(1, W)
            b2 = jnp.tile(bias.reshape(-1), G).reshape(1, W)
            gid = np.arange(W) // C                         # same-group indicator
            p_mat = jnp.asarray(gid[:, None] == gid[None, :], dtype=jnp.bfloat16)

            tm = _pick_row_tile(Mp, W * itemsize, dtype, tile_target, min_steps)
            grid = (pl.cdiv(Mp, tm),)
            out2 = pl.pallas_call(
                partial(_ln_packed_kernel, eps=eps, c=C),
                out_shape=jax.ShapeDtypeStruct((Mp, W), dtype),
                grid=grid,
                in_specs=[
                    pl.BlockSpec((tm, W), lambda i: (i, 0)),
                    pl.BlockSpec((W, W), lambda i: (0, 0)),
                    pl.BlockSpec((1, W), lambda i: (0, 0)),
                    pl.BlockSpec((1, W), lambda i: (0, 0)),
                ],
                out_specs=pl.BlockSpec((tm, W), lambda i: (i, 0)),
                compiler_params=cparams,
            )(x2, p_mat, w2, b2)
            return out2.reshape(orig_shape)

    # Plain layout: channel axis on lanes.  Lane-dense whenever C % 128 == 0
    # (ConvNeXt 384/768); other C fall back here with partially masked lanes.
    x2 = x.reshape(M, C)
    row_bytes = _round_up(C, _LANE) * itemsize
    tm = _pick_row_tile(M, row_bytes, dtype, tile_target, min_steps)
    grid = (pl.cdiv(M, tm),)
    out2 = pl.pallas_call(
        partial(_ln_lane_kernel, eps=eps),
        out_shape=jax.ShapeDtypeStruct((M, C), dtype),
        grid=grid,
        in_specs=[
            pl.BlockSpec((tm, C), lambda i: (i, 0)),
            pl.BlockSpec((1, C), lambda i: (0, 0)),
            pl.BlockSpec((1, C), lambda i: (0, 0)),
        ],
        out_specs=pl.BlockSpec((tm, C), lambda i: (i, 0)),
        compiler_params=cparams,
    )(x2, weight.reshape(1, C), bias.reshape(1, C))
    return out2.reshape(orig_shape)


def _layer_norm_channels_first(x, weight, bias, eps):
    # NCHW normalized over C with no wrapper transpose: view as (N, C, H*W),
    # spatial on lanes (dense), channels on sublanes, reduce over sublanes.
    if x.ndim < 2:
        raise ValueError("channels_first expects input of rank >= 2 (N, C, ...)")
    N, C = int(x.shape[0]), int(x.shape[1])
    HW = int(np.prod(x.shape[2:])) if x.ndim > 2 else 1
    dtype = x.dtype
    itemsize = jnp.dtype(dtype).itemsize
    sub = _sublane_multiple(dtype)

    vmem_limit, min_steps = _hw_config()
    tile_target = _tile_bytes_target(itemsize, vmem_limit)

    x3 = x.reshape(N, C, HW)                                # pure view, no transpose
    c_rows = _round_up(C, sub)
    hw_pad = _round_up(HW, _LANE)
    bytes_per_sample = c_rows * hw_pad * itemsize

    if bytes_per_sample >= tile_target and HW >= _LANE:
        # Large spatial extent: one sample per step, tile the lane (spatial) axis.
        tl = (tile_target // max(c_rows * itemsize, 1)) // _LANE * _LANE
        tl = max(_LANE, min(tl, hw_pad))
        grid = (N, pl.cdiv(HW, tl))
        in_specs = [
            pl.BlockSpec((1, C, tl), lambda n, t: (n, 0, t)),
            pl.BlockSpec((C, 1), lambda n, t: (0, 0)),
            pl.BlockSpec((C, 1), lambda n, t: (0, 0)),
        ]
        out_spec = pl.BlockSpec((1, C, tl), lambda n, t: (n, 0, t))
        dims = ("parallel", "parallel")
    else:
        # Small per-sample tile (e.g. ConvNeXt 7x7 stages): block over the batch
        # axis so each grid step moves ~tile_target bytes.
        nb = max(1, tile_target // max(bytes_per_sample, 1))
        if min_steps > 1:
            nb = min(nb, max(1, -(-N // min_steps)))
        nb = min(nb, N)
        grid = (pl.cdiv(N, nb),)
        in_specs = [
            pl.BlockSpec((nb, C, HW), lambda i: (i, 0, 0)),
            pl.BlockSpec((C, 1), lambda i: (0, 0)),
            pl.BlockSpec((C, 1), lambda i: (0, 0)),
        ]
        out_spec = pl.BlockSpec((nb, C, HW), lambda i: (i, 0, 0))
        dims = ("parallel",)

    out3 = pl.pallas_call(
        partial(_ln_cf_kernel, eps=eps),
        out_shape=jax.ShapeDtypeStruct((N, C, HW), dtype),
        grid=grid,
        in_specs=in_specs,
        out_specs=out_spec,
        compiler_params=pltpu.CompilerParams(
            dimension_semantics=dims,
            vmem_limit_bytes=vmem_limit,
        ),
    )(x3, weight.reshape(C, 1), bias.reshape(C, 1))
    return out3.reshape(x.shape)


def layer_norm_pallas(x, weight, bias, *, eps=1e-6, data_format="channels_last"):
    if data_format not in ("channels_last", "channels_first"):
        raise NotImplementedError
    if data_format == "channels_first":
        return _layer_norm_channels_first(x, weight, bias, eps)
    return _layer_norm_channels_last(x, weight, bias, eps)


# --------------------------------------------------------------------------------------
# Reference + test
# --------------------------------------------------------------------------------------

def _reference(x, weight, bias, eps, data_format):
    if data_format == "channels_last":
        u = jnp.mean(x, axis=-1, keepdims=True)
        s = jnp.mean((x - u) ** 2, axis=-1, keepdims=True)
        return (x - u) / jnp.sqrt(s + eps) * weight + bias
    else:
        u = jnp.mean(x, axis=1, keepdims=True)
        s = jnp.mean((x - u) ** 2, axis=1, keepdims=True)
        xn = (x - u) / jnp.sqrt(s + eps)
        return weight[:, None, None] * xn + bias[:, None, None]


if __name__ == "__main__":
    key = jax.random.PRNGKey(0)
    N, C, H, W = 2, 4, 16, 16
    eps = 1e-6

    # Deterministic, non-trivial affine params (exercise the weight/bias plumbing;
    # the module's __init__ values of ones/zeros are a special case of this).
    weight = jnp.ones((C,), dtype=jnp.float32) + 0.1 * jnp.arange(C, dtype=jnp.float32)
    bias = 0.05 * jnp.arange(C, dtype=jnp.float32)

    k1, k2 = jax.random.split(key)

    # channels_first: NCHW input (PyTorch conv layout) -- no transposes anywhere.
    x_cf = jax.random.normal(k1, (N, C, H, W), dtype=jnp.float32)
    y_cf = layer_norm_pallas(x_cf, weight, bias, eps=eps, data_format="channels_first")
    y_cf = jax.block_until_ready(y_cf)
    ref_cf = _reference(x_cf, weight, bias, eps, "channels_first")
    np.testing.assert_allclose(np.asarray(y_cf), np.asarray(ref_cf), rtol=1e-5, atol=1e-5)

    # channels_last: (..., C) input (module default) -- exercises the lane-dense
    # packed small-C path (C=4 -> W=128, G=32).
    x_cl = jax.random.normal(k2, (N, H, W, C), dtype=jnp.float32)
    y_cl = layer_norm_pallas(x_cl, weight, bias, eps=eps, data_format="channels_last")
    y_cl = jax.block_until_ready(y_cl)
    ref_cl = _reference(x_cl, weight, bias, eps, "channels_last")
    np.testing.assert_allclose(np.asarray(y_cl), np.asarray(ref_cl), rtol=1e-5, atol=1e-5)

    print("KERNEL_OK")
</pallas_src>

<mosaic_0001>
module attributes {stable_mosaic.version = 11 : i64} {
  func.func @_ln_cf_kernel(%arg0: i32, %arg1: memref<1x4x256xf32, #tpu.memory_space<vmem>>, %arg2: memref<4x1xf32, #tpu.memory_space<vmem>>, %arg3: memref<4x1xf32, #tpu.memory_space<vmem>>, %arg4: memref<1x4x256xf32, #tpu.memory_space<vmem>>) attributes {dimension_semantics = [#tpu.dimension_semantics<parallel>], iteration_bounds = array<i64: 2>, scalar_prefetch = 0 : i64, scratch_operands = 0 : i64, tpu.core_type = #tpu.core_type<tc>, window_params = [{transform_indices = @transform_0, window_bounds = array<i64: 1, 4, 256>}, {pipeline_mode = #tpu.pipeline_mode<synchronous>, transform_indices = @transform_1, window_bounds = array<i64: 4, 1>}, {pipeline_mode = #tpu.pipeline_mode<synchronous>, transform_indices = @transform_2, window_bounds = array<i64: 4, 1>}, {transform_indices = @transform_3, window_bounds = array<i64: 1, 4, 256>}]} {
    %c0 = arith.constant 0 : index
    %c0_0 = arith.constant 0 : index
    %c0_1 = arith.constant 0 : index
    %0 = vector.load %arg1[%c0, %c0_0, %c0_1] : memref<1x4x256xf32, #tpu.memory_space<vmem>>, vector<1x4x256xf32>
    %cst = arith.constant dense<0.000000e+00> : vector<1x256xf32>
    %1 = vector.multi_reduction <add>, %0, %cst [1] : vector<1x4x256xf32> to vector<1x256xf32>
    %2 = vector.shape_cast %1 : vector<1x256xf32> to vector<1x1x256xf32>
    %cst_2 = arith.constant 4.000000e+00 : f32
    %3 = vector.broadcast %cst_2 : f32 to vector<1x1x256xf32>
    %4 = arith.divf %2, %3 : vector<1x1x256xf32>
    %5 = arith.mulf %0, %0 : vector<1x4x256xf32>
    %cst_3 = arith.constant dense<0.000000e+00> : vector<1x256xf32>
    %6 = vector.multi_reduction <add>, %5, %cst_3 [1] : vector<1x4x256xf32> to vector<1x256xf32>
    %7 = vector.shape_cast %6 : vector<1x256xf32> to vector<1x1x256xf32>
    %cst_4 = arith.constant 4.000000e+00 : f32
    %8 = vector.broadcast %cst_4 : f32 to vector<1x1x256xf32>
    %9 = arith.divf %7, %8 : vector<1x1x256xf32>
    %10 = arith.mulf %4, %4 : vector<1x1x256xf32>
    %11 = arith.subf %9, %10 : vector<1x1x256xf32>
    %cst_5 = arith.constant 0.000000e+00 : f32
    %12 = vector.broadcast %cst_5 : f32 to vector<1x1x256xf32>
    %13 = arith.maximumf %11, %12 : vector<1x1x256xf32>
    %cst_6 = arith.constant 9.99999997E-7 : f32
    %14 = vector.broadcast %cst_6 : f32 to vector<1x1x256xf32>
    %15 = arith.addf %13, %14 : vector<1x1x256xf32>
    %16 = math.rsqrt %15 : vector<1x1x256xf32>
    %c0_7 = arith.constant 0 : index
    %c0_8 = arith.constant 0 : index
    %17 = vector.load %arg2[%c0_7, %c0_8] : memref<4x1xf32, #tpu.memory_space<vmem>>, vector<4x1xf32>
    %18 = vector.shape_cast %17 : vector<4x1xf32> to vector<1x4x1xf32>
    %c0_9 = arith.constant 0 : index
    %c0_10 = arith.constant 0 : index
    %19 = vector.load %arg3[%c0_9, %c0_10] : memref<4x1xf32, #tpu.memory_space<vmem>>, vector<4x1xf32>
    %20 = vector.shape_cast %19 : vector<4x1xf32> to vector<1x4x1xf32>
    %21 = vector.broadcast %4 : vector<1x1x256xf32> to vector<1x4x256xf32>
    %22 = arith.subf %0, %21 : vector<1x4x256xf32>
    %23 = vector.broadcast %16 : vector<1x1x256xf32> to vector<1x4x256xf32>
    %24 = arith.mulf %22, %23 : vector<1x4x256xf32>
    %25 = vector.broadcast %18 : vector<1x4x1xf32> to vector<1x4x256xf32>
    %26 = arith.mulf %24, %25 : vector<1x4x256xf32>
    %27 = vector.broadcast %20 : vector<1x4x1xf32> to vector<1x4x256xf32>
    %28 = arith.addf %26, %27 : vector<1x4x256xf32>
    %c0_11 = arith.constant 0 : index
    %c0_12 = arith.constant 0 : index
    %c0_13 = arith.constant 0 : index
    %29 = vector.load %arg4[%c0_11, %c0_12, %c0_13] : memref<1x4x256xf32, #tpu.memory_space<vmem>>, vector<1x4x256xf32>
    tpu.vector_store %arg4[%c0_11, %c0_12, %c0_13], %28 {strides = array<i32>} : memref<1x4x256xf32, #tpu.memory_space<vmem>>, vector<1x4x256xf32>,
    return
  }
  func.func @transform_0(%arg0: i32) -> (i32, i32, i32) {
    %c0_i32 = arith.constant 0 : i32
    %c0_i32_0 = arith.constant 0 : i32
    %c0_i32_1 = arith.constant 0 : i32
    return %arg0, %c0_i32, %c0_i32_0 : i32, i32, i32
  }
  func.func @transform_1(%arg0: i32) -> (i32, i32) {
    %c0_i32 = arith.constant 0 : i32
    %c0_i32_0 = arith.constant 0 : i32
    %c0_i32_1 = arith.constant 0 : i32
    return %c0_i32, %c0_i32_0 : i32, i32
  }
  func.func @transform_2(%arg0: i32) -> (i32, i32) {
    %c0_i32 = arith.constant 0 : i32
    %c0_i32_0 = arith.constant 0 : i32
    %c0_i32_1 = arith.constant 0 : i32
    return %c0_i32, %c0_i32_0 : i32, i32
  }
  func.func @transform_3(%arg0: i32) -> (i32, i32, i32) {
    %c0_i32 = arith.constant 0 : i32
    %c0_i32_0 = arith.constant 0 : i32
    %c0_i32_1 = arith.constant 0 : i32
    return %arg0, %c0_i32, %c0_i32_0 : i32, i32, i32
  }
}

</mosaic_0001>

<bundles_post_ra>
// kernel: tpu_custom_call.1
= control target key start
LH: loop header
LB: loop body
LE: loop exit
PB: predicated region body
PF: predicated region fallthrough
CT: control target
= control target key end

     0   :  { %8 = vsyncpa [#allocation3], 0  ;;  %s726_s0 = inlined_call_operand.hbm [shape: f32[2,4,256], index: 0, kind: input, shape index: {}]   ;;  %s727_s1 = inlined_call_operand.vmem [shape: f32[4,1], index: 1, kind: input, shape index: {}]   ;;  %s728_s2 = inlined_call_operand.vmem [shape: f32[4,1], index: 2, kind: input, shape index: {}]   ;;  %s729_s3 = inlined_call_operand.hbm [shape: f32[2,4,256], index: 3, kind: output, shape index: {}]  }
   0x1   :  { %10 = vsyncpa [#allocation3 + $0x1], 0 }
   0x2   :  { %11 = vsyncpa [#allocation4], 0 }
   0x3   :  { %13 = vsyncpa [#allocation4 + $0x1], 0  ;;  %s555_s12 = smov 0   ;;  %s557_s13 = smov 0  }
   0x4   :  { %s559_s14 = smov 0   ;;  %s561_s15 = smov 0  }
   0x5 LB: > { %s576_s16 = sadd.s32 4294967295, %s529_s15   ;;  %s363_s17 = sadd.s32 4294967294, %s529_s15   ;;  %s529_s15 = sphi %s561_s15, %s744_s15   ;;  %s525_s14 = sphi %s559_s14, %s743_s14   ;;  %s521_s13 = sphi %s557_s13, %s742_s13   ;;  %s517_s12 = sphi %s555_s12, %s741_s12  }
   0x6   : > { %s580_s18 = sadd.s32 1, %s529_s15   ;;  %s26_s19 = sadd.s32 1, %s525_s14 }
   0x7   : > { %s23_s20 = ssub.s32 %s529_s15, %s580_s18  ;;  %p33_p0 = scmp.ne.s32.totalorder %s525_s14, %s521_s13 }
   0x8   : > { %p24_p1 = scmp.eq.s32.totalorder %s23_s20, 0  ;;  %p34_p2 = scmp.eq.s32.totalorder %s529_s15, 0 }
   0x9   : > { %p39_p3 = scmp.ne.s32.totalorder %s521_s13, %s517_s12  ;;  %p40_p4 = scmp.eq.s32.totalorder %s576_s16, 0 }
   0xa   : > { %s592_s21 = scalar_select %p24_p1, %s525_s14, %s26_s19  }
   0xb   : > { %p594_p5 = por %p34_p2, %p33_p0  ;;  %p598_p6 = por %p40_p4, %p39_p3 }
   0xc   : > { %p105_p7 = scmp.eq.s32.totalorder %s576_s16, 1  ;;  %p111_p8 = scmp.eq.s32.totalorder %s363_s17, 1 }
   0xd   : > { %p391_p10 = scmp.lt.s32.totalorder %s529_s15, 2  ;;  %s137_s26 = sand.u32 1, %s525_s14  }
   0xe   : > { %p605_p11 = por %p105_p7, %p33_p0  ;;  %p609_p12 = por %p111_p8, %p39_p3 }
   0xf   : > { %s377_s27 = sshll.u32 %s529_s15, 7  ;;  %s366_s28 = sshll.u32 %s137_s26, 3 }
  0x10   : > { %s733_s24 = scalar_select %p605_p11, 1, 0 }
  0x11   : > { %s734_s25 = scalar_select %p609_p12, 1, 0 }
  0x12   : > { %s618_s4 = scalar_lea.hbm %s726_s0, %s377_s27  ;;  %s141_s5 = scalar_lea.vmem [#allocation2], %s366_s28 }
  0x13   : > { %s149_s6 = sshll.u32 %s141_s5, 4  ;;  %p622_p13 = pnand %p391_p10, %p594_p5  ;;  %s626_s6 = int_to_ptr.vmem [resolvable:$true] %s149_s6 }
  0x14   : > { %s138_s8 = scalar_lea.sflag [#allocation3], %s137_s26  ;;  %s433_s9 = scalar_lea.hbm %s618_s4, 128 }
  0x15   : > { %p434_p2 = scmp.ne.s32.totalorder %s618_s4, %s433_s9  ;;  %p435_p3 = pneg %p622_p13 }
  0x16   : > { %s438_s17 = scalar_lea.hbm %s726_s0, 256  ;;  %p439_p5 = scmp.lt.u32.totalorder %s618_s4, %s726_s0 }
  0x17   : > { %p436_p4 = pnand %p435_p3, %p434_p2  ;;  %p440_p8 = scmp.lt.u32.totalorder %s438_s17, %s433_s9 }
  0x18   : > { %p442_p9 = scmp.lt.u32.totalorder %s433_s9, %s618_s4 }
  0x19   : > { %p437_p7 = pneg %p436_p4  ;;  %p441_p10 = por %p440_p8, %p439_p5 }
  0x1b   : > { %p443_p0 = por %p442_p9, %p441_p10 }
  0x1d   : > { %p444_p1 = pnand %p443_p0, %p437_p7 }
  0x1f   : > { %447 = shalt.err (!%p444_p1)
}
  0x20   : > { %s448_s22 = scalar_lea.vmem %s626_s6, 128  ;;  %s531_s26 = smov [#allocation2]  }
  0x21   : > { %p449_p2 = scmp.ne.s32.totalorder %s626_s6, %s448_s22  ;;  %s453_s27 = sshll.u32 %s531_s26, 4  ;;  %s454_s27 = int_to_ptr.vmem [resolvable:$false] %s453_s27 }
  0x22   : > { %s455_s28 = scalar_lea.vmem %s454_s27, 256  ;;  %p456_p11 = scmp.lt.s32.totalorder %s626_s6, %s454_s27 }
  0x23   : > { %p451_p4 = pnand %p449_p2, %p435_p3  ;;  %p457_p5 = scmp.lt.s32.totalorder %s455_s28, %s448_s22 }
  0x25   : > { %p452_p12 = pneg %p451_p4  ;;  %p458_p8 = por %p457_p5, %p456_p11 }
  0x27   : > { %p459_p9 = pnand %p458_p8, %p452_p12 }
  0x29   : > { %462 = shalt.err (!%p459_p9)
}
  0x2a   : > { %386 = dma.hbm_to_vmem [thread:$0]  (!%p622_p13), %s618_s4, 128, %s626_s6, %s138_s8  }
  0x2b   : > { %p736_p0 = scmp.lt.s32.totalorder %s529_s15, 3  ;;  %p737_p1 = scmp.ge.s32.totalorder %s529_s15, 1 }
  0x2d   : > { %p155_p3 = pnand %p737_p1, %p736_p0 }
  0x2e   : > { %s660_s29 = sand.u32 (!%p155_p3), 1, %s521_s13  }
  0x2f   : > { %158 = sbr.rel (%p155_p3) target bundleno = 207 (0xcf), region = 32  ;;  %s370_s30 = sshll.u32 (!%p155_p3), %s660_s29, 3 }
  0x30   : > { %s161_s5 = scalar_lea.sflag (!%p155_p3), [#allocation3], %s660_s29  ;;  %s164_s7 = scalar_lea.vmem (!%p155_p3), [#allocation2], %s370_s30 }
  0x36   : > { %508 = dma.done.wait (%p598_p6), %s161_s5, 128  }
  0x37   : > { %510 = vsyncadd (%p598_p6), %s161_s5, 4294967168  ;;  %v532_v0 = vmov 0   ;;  %v239_v1 = vld [vmem:[%s727_s1] sm:$0xf]  ;;  %vm191_vm0 = vcmask 1043456   ;;  %v258_v49 = vlaneseq  ;;  %s378_s23 = sshll.u32 %s576_s16, 7 }
  0x38   : > { %427 = vset.pattern.permute.xlu0 %v532_v0  ;;  %v240_v2 = vld [vmem:[%s728_s2] sm:$0xf]  ;;  %v533_v47 = vmov 839922192   ;;  %s186_s10 = scalar_lea.vmem [#allocation5], %s370_s30  ;;  %s682_s20 = scalar_lea.hbm %s729_s3, %s378_s23 }
  0x39   : > { %253 = vperm.xlu0 %427, %v239_v1   ;;  %v187_v3 = vld [vmem:[%s164_s7] sm:$0xff]  ;;  %v256_v48 = vunpack.c.l.s4 %v533_v47  ;;  %v259_v52 = vshrl.u32 %v258_v49, 7  ;;  %s293_s11 = sshll.u32 %s186_s10, 4  ;;  %s279_s22 = scalar_lea.sflag [#allocation4], %s660_s29  ;;  %s684_s11 = int_to_ptr.vmem [resolvable:$true] %s293_s11 }
  0x3a   : > { %v189_v4 = vcombine.high %v187_v3, %v187_v3  ;;  %v209_v5 = vmul.f32 %v187_v3, %v187_v3  ;;  %v192_v6 = vsel %vm191_vm0, %v187_v3, 0.0  ;;  %s463_s26 = scalar_lea.vmem %s684_s11, 128  ;;  %p738_p11 = scmp.ne.s32.totalorder %s733_s24, 0 }
  0x3b   : > { %v193_v9 = vrot.slane %v192_v6, 4  ;;  %v257_v51 = vunpack.c.0.s8 %v256_v48  ;;  %p464_p6 = scmp.ne.s32.totalorder %s684_s11, %s463_s26  ;;  %s534_s16 = smov [#allocation5]  }
  0x3c   : > { %v199_v7 = vsel %vm191_vm0, %v189_v4, 0.0  ;;  %v211_v8 = vcombine.high %v209_v5, %v209_v5  ;;  %v213_v11 = vsel %vm191_vm0, %v209_v5, 0.0  ;;  %s467_s27 = sshll.u32 %s534_s16, 4  ;;  %s468_s27 = int_to_ptr.vmem [resolvable:$false] %s467_s27 }
  0x3d   : > { %266 = vperm.xlu0 %427, %v240_v2   ;;  %v200_v10 = vrot.slane %v199_v7, 4  ;;  %v194_v13 = vadd.f32 %v193_v9, %v192_v6  ;;  %v214_v14 = vrot.slane %v213_v11, 4  ;;  %v260_v55 = vsub.s32 %v257_v51, %v259_v52  ;;  %p465_p12 = pnand %p464_p6, %p738_p11  ;;  %s469_s28 = scalar_lea.vmem %s468_s27, 256 }
  0x3e   : > { %v220_v12 = vsel %vm191_vm0, %v211_v8, 0.0  ;;  %p470_p7 = scmp.lt.s32.totalorder %s684_s11, %s468_s27  ;;  %p471_p10 = scmp.lt.s32.totalorder %s469_s28, %s463_s26 }
  0x3f   : > { %v201_v15 = vadd.f32 %v200_v10, %v199_v7  ;;  %v221_v16 = vrot.slane %v220_v12, 4  ;;  %v195_v17 = vrot.slane %v194_v13, 2  ;;  %v215_v18 = vadd.f32 %v214_v14, %v213_v11  ;;  %p466_p13 = pneg %p465_p12 }
  0x40   : > { %p472_p2 = por %p471_p10, %p470_p7 }
  0x41   : > { %v202_v19 = vrot.slane %v201_v15, 2  ;;  %v222_v20 = vadd.f32 %v221_v16, %v220_v12  ;;  %v196_v21 = vadd.f32 %v195_v17, %v194_v13  ;;  %v216_v22 = vrot.slane %v215_v18, 2 }
  0x42   : > { %p473_p4 = pnand %p472_p2, %p466_p13 }
  0x43   : > { %v203_v23 = vadd.f32 %v202_v19, %v201_v15  ;;  %v223_v24 = vrot.slane %v222_v20, 2  ;;  %v197_v25 = vrot.slane %v196_v21, 1  ;;  %v217_v26 = vadd.f32 %v216_v22, %v215_v18 }
  0x45   : > { %v204_v27 = vrot.slane %v203_v23, 1  ;;  %v224_v28 = vadd.f32 %v223_v24, %v222_v20  ;;  %v198_v29 = vadd.f32 %v197_v25, %v196_v21  ;;  %v218_v30 = vrot.slane %v217_v26, 1 }
  0x47   : > { %v205_v31 = vadd.f32 %v204_v27, %v203_v23  ;;  %v225_v32 = vrot.slane %v224_v28, 1  ;;  %v207_v33 = vmul.f32 0.25, %v198_v29  ;;  %v219_v34 = vadd.f32 %v218_v30, %v217_v26 }
  0x49   : > { %v208_v35 = vmul.f32 0.25, %v205_v31  ;;  %v226_v36 = vadd.f32 %v225_v32, %v224_v28  ;;  %v227_v37 = vmul.f32 0.25, %v219_v34  ;;  %v229_v38 = vmul.f32 %v207_v33, %v207_v33 }
  0x4b   : > { %v228_v39 = vmul.f32 0.25, %v226_v36  ;;  %v230_v40 = vmul.f32 %v208_v35, %v208_v35  ;;  %v231_v41 = vsub.f32 %v227_v37, %v229_v38  ;;  %v243_v53 = vcombine.low %v207_v33, %v208_v35 }
  0x4d   : > { %v232_v42 = vsub.f32 %v228_v39, %v230_v40  ;;  %v233_v43 = vmax.f32 %v231_v41, 0.0  ;;  %v245_v56 = vsub.f32 %v187_v3, %v243_v53 }
  0x4f   : > { %v234_v44 = vmax.f32 %v232_v42, 0.0  ;;  %v235_v45 = vadd.f32 1e-06, %v233_v43 }
  0x51   : > { %v236_v46 = vadd.f32 1e-06, %v234_v44  ;;  %429 = vrsqrt.f32 %v235_v45 }
  0x53   : > { %431 = vrsqrt.f32 %v236_v46 }
  0x5b   : > { %v430_v50 = vpop.eup %429 }
  0x5d   : > { %v432_v54 = vpop.eup %431 }
  0x5e   : > { %v248_v57 = vcombine.low %v430_v50, %v432_v54 }
  0x60   : > { %v250_v59 = vmul.f32 %v248_v57, %v245_v56 }
  0xb8   : > { %v254_v58 = vpop.permute.xlu0 %253 }
  0xb9   : > { %v261_v60 = vrot.slane %v254_v58, %v260_v55 }
  0xbb   : > { %v263_v62 = vmul.f32 %v261_v60, %v250_v59 }
  0xbc   : > { %v267_v61 = vpop.permute.xlu0 %266 }
  0xbd   : > { %v274_v63 = vrot.slane %v267_v61, %v260_v55 }
  0xbf   : > { %v276_v0 = vadd.f32 %v274_v63, %v263_v62 }
  0xc1   : > { %277 = vst [vmem:[%s186_s10] sm:$0xff] %v276_v0 }
  0xc2   : > { %476 = shalt.err (!%p473_p4)
}
  0xc3   : > { %s477_s29 = scalar_lea.hbm %s682_s20, 128  ;;  %s481_s7 = scalar_lea.hbm %s729_s3, 256 }
  0xc4   : > { %p478_p5 = scmp.ne.s32.totalorder %s682_s20, %s477_s29  ;;  %p482_p0 = scmp.lt.u32.totalorder %s682_s20, %s729_s3 }
  0xc5   : > { %p483_p1 = scmp.lt.u32.totalorder %s481_s7, %s477_s29  ;;  %p485_p6 = scmp.lt.u32.totalorder %s477_s29, %s682_s20 }
  0xc6   : > { %p479_p8 = pnand %p478_p5, %p738_p11 }
  0xc7   : > { %p484_p3 = por %p483_p1, %p482_p0 }
  0xc8   : > { %p480_p9 = pneg %p479_p8 }
  0xc9   : > { %p486_p12 = por %p485_p6, %p484_p3 }
  0xcb   : > { %p487_p13 = pnand %p486_p12, %p480_p9 }
  0xcd   : > { %490 = shalt.err (!%p487_p13)
}
  0xce   : > { %381 = dma.vmem_to_hbm [thread:$0]  (%p738_p11), %s684_s11, 128, %s682_s20, %s279_s22  }
  0xcf PF: > { %s305_s8 = sand.u32 1, %s517_s12   ;;  %p739_p7 = scmp.ne.s32.totalorder %s734_s25, 0 }
  0xd0   : > { %p740_p10 = scmp.ge.s32.totalorder %s529_s15, 2  ;;  %s306_s9 = scalar_lea.sflag [#allocation4], %s305_s8 }
  0xd2   : > { %p388_p2 = pnand %p740_p10, %p739_p7 }
  0xd4   : > { %512 = dma.done.wait (!%p388_p2), %s306_s9, 128  }
  0xd5   : > { %514 = vsyncadd (!%p388_p2), %s306_s9, 4294967168  ;;  %p16_p4 = scmp.ge.s32.totalorder %s580_s18, 4   ;;  %s741_s12 = smov %s521_s13 }
  0xd6   : > { %s742_s13 = smov %s525_s14  ;;  %s743_s14 = smov %s592_s21 }
  0xd7   : > { %s744_s15 = smov %s580_s18  ;;  %18 = sbr.rel (!%p16_p4) target bundleno = 5 (0x5), region = 77 }
  0xde   :  { %311 = vsyncpa [#allocation3], 1 }
  0xdf   :  { %313 = vsyncpa [#allocation3 + $0x1], 1 }
  0xe0   :  { %314 = vsyncpa [#allocation4], 1 }
  0xe1   :  { %316 = vsyncpa [#allocation4 + $0x1], 1 }

</bundles_post_ra>
